<compile_context>
chip_gen: v6e
topology: v6e:2x2x1
jax: 0.10.0
libtpu: 0.0.40
codegen_flags: <defaults>
</compile_context>

<pallas_src>
import jax
import jax.numpy as jnp
from jax.experimental import pallas as pl
from jax.experimental.pallas import tpu as pltpu


# ----------------------------------------------------------------------------
# Pallas kernel: fused edge-construction + shared-MLP (1x1 convs) + ReLU + max
# ----------------------------------------------------------------------------
def _make_sa_mlp_kernel(tile_p, nsample, n_extra_layers):
    def kernel(gx_ref, gf_ref, cf_ref, wx_ref, wf_ref, wcmf_ref, b1_ref, *rest):
        o_ref = rest[-1]
        wb_refs = rest[:-1]

        gx = gx_ref[0]          # (tile_p*nsample, 3)   bf16: grouped_xyz - new_xyz
        gf = gf_ref[0]          # (tile_p*nsample, C)   bf16: grouped features
        cf = cf_ref[0]          # (tile_p, C)           bf16: center features

        # First 1x1 conv with the edge construction folded in:
        #   [gx, gf - cf, cf] @ [Wx; Wf; Wc] = gx@Wx + gf@Wf + cf@(Wc - Wf)
        h = (jnp.dot(gx, wx_ref[...], preferred_element_type=jnp.float32)
             + jnp.dot(gf, wf_ref[...], preferred_element_type=jnp.float32))
        h_ctr = (jnp.dot(cf, wcmf_ref[...], preferred_element_type=jnp.float32)
                 + b1_ref[...])                                  # (tile_p, C1)
        c = h.shape[-1]
        h = h.reshape(tile_p, nsample, c) + h_ctr[:, None, :]
        h = jnp.maximum(h, 0.0)                                  # ReLU (f32)

        # Remaining 1x1 conv layers (bf16 MXU path, f32 accumulation).
        for layer in range(n_extra_layers):
            h = h.reshape(tile_p * nsample, c).astype(jnp.bfloat16)
            w = wb_refs[2 * layer][...]                          # (Cin_l, Cout_l) bf16
            b = wb_refs[2 * layer + 1][...]                      # (1, Cout_l)     f32
            h = jnp.dot(h, w, preferred_element_type=jnp.float32) + b
            h = jnp.maximum(h, 0.0)
            c = h.shape[-1]
            h = h.reshape(tile_p, nsample, c)

        # max_pool2d(kernel_size=[1, nsample]) == max over the nsample axis.
        o_ref[0] = jnp.max(h, axis=1).astype(o_ref.dtype)

    return kernel


def _choose_tile_p(P, S, C, widths, budget_bytes):
    """Largest npoint-tile (multiple of 8, divides P) fitting the VMEM budget."""
    def est(tp):
        in_b = 2 * (tp * S * (3 + C) * 2 + tp * C * 2)   # bf16 inputs, double-buffered
        mid_b = 2 * tp * S * max(widths) * 4             # f32 intermediates
        out_b = 2 * tp * widths[-1] * 4                  # f32 output, double-buffered
        return in_b + mid_b + out_b

    cands = [tp for tp in range(8, P + 1, 8) if P % tp == 0]
    if not cands:
        return P                                         # tiny P: one full block
    fitting = [tp for tp in cands if est(tp) <= budget_bytes]
    return max(fitting) if fitting else min(cands)


def sa_mlp_maxpool(grouped_xyz, grouped_feat, center_feat, weights, biases,
                   vmem_budget_bytes=24 * 1024 * 1024):
    """grouped_xyz: (B,P,S,3) relative coords; grouped_feat: (B,P,S,C);
    center_feat: (B,P,C).  weights[l]: (Cin_l, Cout_l) (BN folded), biases[l]: (Cout_l,).
    weights[0] has Cin = 3 + 2*C (edge concat).  Returns (B, P, Cout_last) f32."""
    B, P, S, _ = grouped_xyz.shape
    C = grouped_feat.shape[-1]
    assert weights[0].shape[0] == 3 + 2 * C, "first layer expects [xyz, feat-ctr, ctr]"
    n_layers = len(weights)
    widths = [w.shape[1] for w in weights]
    cout = widths[-1]

    # bf16 inputs / weights (f32 accumulation in-kernel).
    gx = grouped_xyz.reshape(B, P * S, 3).astype(jnp.bfloat16)
    gf = grouped_feat.reshape(B, P * S, C).astype(jnp.bfloat16)
    cf = center_feat.astype(jnp.bfloat16)

    w1 = weights[0]
    wx = w1[:3].astype(jnp.bfloat16)                               # (3, C1)
    wf = w1[3:3 + C].astype(jnp.bfloat16)                          # (C, C1)
    wcmf = (w1[3 + C:3 + 2 * C] - w1[3:3 + C]).astype(jnp.bfloat16)  # Wc - Wf
    b1 = biases[0].reshape(1, -1).astype(jnp.float32)

    extra = []
    for w, b in zip(weights[1:], biases[1:]):
        extra += [w.astype(jnp.bfloat16), b.reshape(1, -1).astype(jnp.float32)]

    tile_p = _choose_tile_p(P, S, C, widths, vmem_budget_bytes)
    grid = (B, P // tile_p)

    xmap = lambda b, p: (b, p, 0)
    wmap = lambda b, p: (0, 0)

    in_specs = [
        pl.BlockSpec((1, tile_p * S, 3), xmap),
        pl.BlockSpec((1, tile_p * S, C), xmap),
        pl.BlockSpec((1, tile_p, C), xmap),
        pl.BlockSpec(wx.shape, wmap),
        pl.BlockSpec(wf.shape, wmap),
        pl.BlockSpec(wcmf.shape, wmap),
        pl.BlockSpec(b1.shape, wmap),
    ]
    args = [gx, gf, cf, wx, wf, wcmf, b1]
    for a in extra:
        in_specs.append(pl.BlockSpec(a.shape, wmap))
        args.append(a)

    out_spec = pl.BlockSpec((1, tile_p, cout), xmap)

    kernel = _make_sa_mlp_kernel(tile_p, S, n_layers - 1)
    fn = pl.pallas_call(
        kernel,
        out_shape=jax.ShapeDtypeStruct((B, P, cout), jnp.float32),
        grid=grid,
        in_specs=in_specs,
        out_specs=out_spec,
        compiler_params=pltpu.CompilerParams(
            dimension_semantics=("parallel", "parallel"),
            vmem_limit_bytes=48 * 1024 * 1024,
        ),
    )
    return fn(*args)


# ----------------------------------------------------------------------------
# Glue: ball query + grouping (data-dependent gathers, plain JAX)
# ----------------------------------------------------------------------------
def ball_query(xyz, new_xyz, radius, nsample):
    """xyz: (B,N,3), new_xyz: (B,P,3) -> idx (B,P,nsample) int32.
    Matches pointnet2 CUDA ball_query: first `nsample` in-radius points in
    original index order; empty slots filled with the first found index;
    completely empty balls yield index 0 (zero-initialized output)."""
    B, N, _ = xyz.shape
    d2 = jnp.sum((new_xyz[:, :, None, :] - xyz[:, None, :, :]) ** 2, axis=-1)
    within = d2 < radius * radius                                  # (B,P,N)

    def one_query(within_row):
        slot = jnp.cumsum(within_row.astype(jnp.int32)) - 1        # position among hits
        slot = jnp.where(within_row & (slot < nsample), slot, nsample)
        out = jnp.full((nsample + 1,), -1, dtype=jnp.int32)
        out = out.at[slot].set(jnp.arange(N, dtype=jnp.int32), mode="drop")
        out = out[:nsample]
        first = out[0]
        out = jnp.where(out < 0, first, out)                       # fill empty slots
        out = jnp.where(out < 0, 0, out)                           # empty ball -> 0
        return out

    return jax.vmap(jax.vmap(one_query))(within)


def pointnet2_sa_forward(xyz, features, npoint, nsample, radius,
                         weights, biases):
    """Forward of _PointNet2SAModuleBase with one QueryAndGroup grouper,
    use_edge=True, use_xyz=True.
    Returns (new_xyz (B,P,3), new_features (B,Cout,P), idx (B,P))."""
    B, N, _ = xyz.shape

    # idx = arange(npoint) per batch; gathering -> the first npoint points.
    idx = jnp.tile(jnp.arange(npoint, dtype=jnp.int32)[None, :], (B, 1))
    new_xyz = xyz[:, :npoint, :]                                   # (B,P,3)

    features_t = jnp.transpose(features, (0, 2, 1))                # (B,N,C)
    center_features = features_t[:, :npoint, :]                    # (B,P,C)

    # QueryAndGroup grouper (channels-last).  Edge construction + MLP + pool
    # are fused inside the Pallas kernel.
    grp_idx = ball_query(xyz, new_xyz, radius, nsample)            # (B,P,S)
    grouped_xyz = jnp.take_along_axis(
        xyz[:, None, :, :], grp_idx[..., None], axis=2)            # (B,P,S,3)
    grouped_xyz = grouped_xyz - new_xyz[:, :, None, :]             # relative
    grouped_feat = jnp.take_along_axis(
        features_t[:, None, :, :], grp_idx[..., None], axis=2)     # (B,P,S,C)

    pooled = sa_mlp_maxpool(grouped_xyz, grouped_feat, center_features,
                            weights, biases)                       # (B,P,Cout)

    new_features = jnp.transpose(pooled, (0, 2, 1))                # (B,Cout,P)
    return new_xyz, new_features, idx


# ----------------------------------------------------------------------------
# Pure-JAX reference of the hot path (emulates the kernel's bf16 rounding)
# ----------------------------------------------------------------------------
def reference_mlp_maxpool(gxyz, gfeat, center, weights, biases):
    rb = lambda a: a.astype(jnp.bfloat16).astype(jnp.float32)
    gxyz, gfeat, center = rb(gxyz), rb(gfeat), rb(center)
    cexp = jnp.broadcast_to(center[:, :, None, :], gfeat.shape)
    h = jnp.concatenate([gxyz, gfeat - cexp, cexp], axis=-1)
    for i, (w, b) in enumerate(zip(weights, biases)):
        if i > 0:
            h = rb(h)
        h = jnp.maximum(
            jnp.einsum("bpsc,cd->bpsd", h, rb(w)) + b.astype(jnp.float32), 0.0)
    return jnp.max(h, axis=2)


# ----------------------------------------------------------------------------
if __name__ == "__main__":
    key = jax.random.PRNGKey(0)

    # Small shapes consistent with the module's forward.
    # nsample multiple of 8, last MLP width lane-dense (128).
    B, N, C = 2, 32, 4
    npoint, nsample, radius = 16, 8, 0.8
    mlp_channels = [3 + 2 * C, 32, 128]        # Cin = 3 + C + C = 11

    k_xyz, k_feat, *k_w = jax.random.split(key, 2 + 2 * (len(mlp_channels) - 1))
    xyz = jax.random.uniform(k_xyz, (B, N, 3), dtype=jnp.float32)
    features = jax.random.normal(k_feat, (B, C, N), dtype=jnp.float32)

    # Deterministic parameter init.  Conv2d 1x1 weights (Cout,Cin,1,1) stored
    # transposed as (Cin,Cout); BatchNorm identity-initialized and folded in.
    weights, biases = [], []
    for li in range(len(mlp_channels) - 1):
        cin, cout = mlp_channels[li], mlp_channels[li + 1]
        w = jax.random.normal(k_w[2 * li], (cin, cout), dtype=jnp.float32)
        w = w * (1.0 / jnp.sqrt(cin))
        b = 0.01 * jax.random.normal(k_w[2 * li + 1], (cout,), dtype=jnp.float32)
        weights.append(w)
        biases.append(b)

    new_xyz, new_features, idx = jax.block_until_ready(
        pointnet2_sa_forward(xyz, features, npoint, nsample, radius,
                             weights, biases))

    # Correctness check against a pure-JAX reference of the hot path.
    features_t = jnp.transpose(features, (0, 2, 1))
    center = features_t[:, :npoint, :]
    gidx = ball_query(xyz, xyz[:, :npoint, :], radius, nsample)
    gxyz = (jnp.take_along_axis(xyz[:, None, :, :], gidx[..., None], axis=2)
            - xyz[:, :npoint, :][:, :, None, :])
    gfeat = jnp.take_along_axis(features_t[:, None, :, :], gidx[..., None], axis=2)
    ref = jnp.transpose(reference_mlp_maxpool(gxyz, gfeat, center,
                                              weights, biases), (0, 2, 1))

    assert new_xyz.shape == (B, npoint, 3)
    assert new_features.shape == (B, mlp_channels[-1], npoint)
    assert idx.shape == (B, npoint)
    max_err = float(jnp.max(jnp.abs(new_features - ref)))
    assert jnp.allclose(new_features, ref, atol=5e-2, rtol=5e-2), max_err

    print("KERNEL_OK")
</pallas_src>

<mosaic_0001>
module attributes {stable_mosaic.version = 11 : i64} {
  func.func @kernel(%arg0: i32, %arg1: i32, %arg2: memref<1x128x3xbf16, #tpu.memory_space<vmem>>, %arg3: memref<1x128x4xbf16, #tpu.memory_space<vmem>>, %arg4: memref<1x16x4xbf16, #tpu.memory_space<vmem>>, %arg5: memref<3x32xbf16, #tpu.memory_space<vmem>>, %arg6: memref<4x32xbf16, #tpu.memory_space<vmem>>, %arg7: memref<4x32xbf16, #tpu.memory_space<vmem>>, %arg8: memref<1x32xf32, #tpu.memory_space<vmem>>, %arg9: memref<32x128xbf16, #tpu.memory_space<vmem>>, %arg10: memref<1x128xf32, #tpu.memory_space<vmem>>, %arg11: memref<1x16x128xf32, #tpu.memory_space<vmem>>) attributes {dimension_semantics = [#tpu.dimension_semantics<parallel>, #tpu.dimension_semantics<parallel>], iteration_bounds = array<i64: 2, 1>, scalar_prefetch = 0 : i64, scratch_operands = 0 : i64, tpu.core_type = #tpu.core_type<tc>, window_params = [{transform_indices = @transform_0, window_bounds = array<i64: 1, 128, 3>}, {transform_indices = @transform_1, window_bounds = array<i64: 1, 128, 4>}, {transform_indices = @transform_2, window_bounds = array<i64: 1, 16, 4>}, {pipeline_mode = #tpu.pipeline_mode<synchronous>, transform_indices = @transform_3, window_bounds = array<i64: 3, 32>}, {pipeline_mode = #tpu.pipeline_mode<synchronous>, transform_indices = @transform_4, window_bounds = array<i64: 4, 32>}, {pipeline_mode = #tpu.pipeline_mode<synchronous>, transform_indices = @transform_5, window_bounds = array<i64: 4, 32>}, {pipeline_mode = #tpu.pipeline_mode<synchronous>, transform_indices = @transform_6, window_bounds = array<i64: 1, 32>}, {pipeline_mode = #tpu.pipeline_mode<synchronous>, transform_indices = @transform_7, window_bounds = array<i64: 32, 128>}, {pipeline_mode = #tpu.pipeline_mode<synchronous>, transform_indices = @transform_8, window_bounds = array<i64: 1, 128>}, {transform_indices = @transform_9, window_bounds = array<i64: 1, 16, 128>}]} {
    %c0 = arith.constant 0 : index
    %c0_0 = arith.constant 0 : index
    %c0_1 = arith.constant 0 : index
    %0 = vector.load %arg2[%c0, %c0_0, %c0_1] : memref<1x128x3xbf16, #tpu.memory_space<vmem>>, vector<1x128x3xbf16>
    %1 = vector.shape_cast %0 : vector<1x128x3xbf16> to vector<128x3xbf16>
    %c0_2 = arith.constant 0 : index
    %c0_3 = arith.constant 0 : index
    %c0_4 = arith.constant 0 : index
    %2 = vector.load %arg3[%c0_2, %c0_3, %c0_4] : memref<1x128x4xbf16, #tpu.memory_space<vmem>>, vector<1x128x4xbf16>
    %3 = vector.shape_cast %2 : vector<1x128x4xbf16> to vector<128x4xbf16>
    %c0_5 = arith.constant 0 : index
    %c0_6 = arith.constant 0 : index
    %c0_7 = arith.constant 0 : index
    %4 = vector.load %arg4[%c0_5, %c0_6, %c0_7] : memref<1x16x4xbf16, #tpu.memory_space<vmem>>, vector<1x16x4xbf16>
    %5 = vector.shape_cast %4 : vector<1x16x4xbf16> to vector<16x4xbf16>
    %c0_8 = arith.constant 0 : index
    %c0_9 = arith.constant 0 : index
    %6 = vector.load %arg5[%c0_8, %c0_9] : memref<3x32xbf16, #tpu.memory_space<vmem>>, vector<3x32xbf16>
    %cst = arith.constant dense<0.000000e+00> : vector<128x32xf32>
    %7 = tpu.matmul %1, %6, %cst {dimension_numbers = #tpu.dot_dimension_numbers<[1], [0], [0], [1], [0, 0, 1, 1], [], []>} : vector<128x3xbf16>, vector<3x32xbf16>, vector<128x32xf32> -> vector<128x32xf32>
    %c0_10 = arith.constant 0 : index
    %c0_11 = arith.constant 0 : index
    %8 = vector.load %arg6[%c0_10, %c0_11] : memref<4x32xbf16, #tpu.memory_space<vmem>>, vector<4x32xbf16>
    %cst_12 = arith.constant dense<0.000000e+00> : vector<128x32xf32>
    %9 = tpu.matmul %3, %8, %cst_12 {dimension_numbers = #tpu.dot_dimension_numbers<[1], [0], [0], [1], [0, 0, 1, 1], [], []>} : vector<128x4xbf16>, vector<4x32xbf16>, vector<128x32xf32> -> vector<128x32xf32>
    %10 = arith.addf %7, %9 : vector<128x32xf32>
    %c0_13 = arith.constant 0 : index
    %c0_14 = arith.constant 0 : index
    %11 = vector.load %arg7[%c0_13, %c0_14] : memref<4x32xbf16, #tpu.memory_space<vmem>>, vector<4x32xbf16>
    %cst_15 = arith.constant dense<0.000000e+00> : vector<16x32xf32>
    %12 = tpu.matmul %5, %11, %cst_15 {dimension_numbers = #tpu.dot_dimension_numbers<[1], [0], [0], [1], [0, 0, 1, 1], [], []>} : vector<16x4xbf16>, vector<4x32xbf16>, vector<16x32xf32> -> vector<16x32xf32>
    %c0_16 = arith.constant 0 : index
    %c0_17 = arith.constant 0 : index
    %13 = vector.load %arg8[%c0_16, %c0_17] : memref<1x32xf32, #tpu.memory_space<vmem>>, vector<1x32xf32>
    %14 = vector.broadcast %13 : vector<1x32xf32> to vector<16x32xf32>
    %15 = arith.addf %12, %14 : vector<16x32xf32>
    %16 = vector.shape_cast %10 : vector<128x32xf32> to vector<16x8x32xf32>
    %17 = vector.shape_cast %15 : vector<16x32xf32> to vector<16x1x32xf32>
    %18 = vector.broadcast %17 : vector<16x1x32xf32> to vector<16x8x32xf32>
    %19 = arith.addf %16, %18 : vector<16x8x32xf32>
    %cst_18 = arith.constant 0.000000e+00 : f32
    %20 = vector.broadcast %cst_18 : f32 to vector<16x8x32xf32>
    %21 = arith.maximumf %19, %20 : vector<16x8x32xf32>
    %22 = vector.shape_cast %21 : vector<16x8x32xf32> to vector<128x32xf32>
    %23 = arith.truncf %22 : vector<128x32xf32> to vector<128x32xbf16>
    %c0_19 = arith.constant 0 : index
    %c0_20 = arith.constant 0 : index
    %24 = vector.load %arg9[%c0_19, %c0_20] : memref<32x128xbf16, #tpu.memory_space<vmem>>, vector<32x128xbf16>
    %c0_21 = arith.constant 0 : index
    %c0_22 = arith.constant 0 : index
    %25 = vector.load %arg10[%c0_21, %c0_22] : memref<1x128xf32, #tpu.memory_space<vmem>>, vector<1x128xf32>
    %cst_23 = arith.constant dense<0.000000e+00> : vector<128x128xf32>
    %26 = tpu.matmul %23, %24, %cst_23 {dimension_numbers = #tpu.dot_dimension_numbers<[1], [0], [0], [1], [0, 0, 1, 1], [], []>} : vector<128x32xbf16>, vector<32x128xbf16>, vector<128x128xf32> -> vector<128x128xf32>
    %27 = vector.broadcast %25 : vector<1x128xf32> to vector<128x128xf32>
    %28 = arith.addf %26, %27 : vector<128x128xf32>
    %cst_24 = arith.constant 0.000000e+00 : f32
    %29 = vector.broadcast %cst_24 : f32 to vector<128x128xf32>
    %30 = arith.maximumf %28, %29 : vector<128x128xf32>
    %31 = vector.shape_cast %30 : vector<128x128xf32> to vector<16x8x128xf32>
    %cst_25 = arith.constant dense<0xFF800000> : vector<16x128xf32>
    %32 = vector.multi_reduction <maximumf>, %31, %cst_25 [1] : vector<16x8x128xf32> to vector<16x128xf32>
    %c0_26 = arith.constant 0 : index
    %c0_27 = arith.constant 0 : index
    %c0_28 = arith.constant 0 : index
    %33 = vector.load %arg11[%c0_26, %c0_27, %c0_28] : memref<1x16x128xf32, #tpu.memory_space<vmem>>, vector<1x16x128xf32>
    %34 = vector.shape_cast %33 : vector<1x16x128xf32> to vector<16x128xf32>
    %35 = vector.shape_cast %32 : vector<16x128xf32> to vector<1x16x128xf32>
    tpu.vector_store %arg11[%c0_26, %c0_27, %c0_28], %35 {strides = array<i32>} : memref<1x16x128xf32, #tpu.memory_space<vmem>>, vector<1x16x128xf32>,
    return
  }
  func.func @transform_0(%arg0: i32, %arg1: i32) -> (i32, i32, i32) {
    %c0_i32 = arith.constant 0 : i32
    %c0_i32_0 = arith.constant 0 : i32
    return %arg0, %arg1, %c0_i32 : i32, i32, i32
  }
  func.func @transform_1(%arg0: i32, %arg1: i32) -> (i32, i32, i32) {
    %c0_i32 = arith.constant 0 : i32
    %c0_i32_0 = arith.constant 0 : i32
    return %arg0, %arg1, %c0_i32 : i32, i32, i32
  }
  func.func @transform_2(%arg0: i32, %arg1: i32) -> (i32, i32, i32) {
    %c0_i32 = arith.constant 0 : i32
    %c0_i32_0 = arith.constant 0 : i32
    return %arg0, %arg1, %c0_i32 : i32, i32, i32
  }
  func.func @transform_3(%arg0: i32, %arg1: i32) -> (i32, i32) {
    %c0_i32 = arith.constant 0 : i32
    %c0_i32_0 = arith.constant 0 : i32
    %c0_i32_1 = arith.constant 0 : i32
    return %c0_i32, %c0_i32_0 : i32, i32
  }
  func.func @transform_4(%arg0: i32, %arg1: i32) -> (i32, i32) {
    %c0_i32 = arith.constant 0 : i32
    %c0_i32_0 = arith.constant 0 : i32
    %c0_i32_1 = arith.constant 0 : i32
    return %c0_i32, %c0_i32_0 : i32, i32
  }
  func.func @transform_5(%arg0: i32, %arg1: i32) -> (i32, i32) {
    %c0_i32 = arith.constant 0 : i32
    %c0_i32_0 = arith.constant 0 : i32
    %c0_i32_1 = arith.constant 0 : i32
    return %c0_i32, %c0_i32_0 : i32, i32
  }
  func.func @transform_6(%arg0: i32, %arg1: i32) -> (i32, i32) {
    %c0_i32 = arith.constant 0 : i32
    %c0_i32_0 = arith.constant 0 : i32
    %c0_i32_1 = arith.constant 0 : i32
    return %c0_i32, %c0_i32_0 : i32, i32
  }
  func.func @transform_7(%arg0: i32, %arg1: i32) -> (i32, i32) {
    %c0_i32 = arith.constant 0 : i32
    %c0_i32_0 = arith.constant 0 : i32
    %c0_i32_1 = arith.constant 0 : i32
    return %c0_i32, %c0_i32_0 : i32, i32
  }
  func.func @transform_8(%arg0: i32, %arg1: i32) -> (i32, i32) {
    %c0_i32 = arith.constant 0 : i32
    %c0_i32_0 = arith.constant 0 : i32
    %c0_i32_1 = arith.constant 0 : i32
    return %c0_i32, %c0_i32_0 : i32, i32
  }
  func.func @transform_9(%arg0: i32, %arg1: i32) -> (i32, i32, i32) {
    %c0_i32 = arith.constant 0 : i32
    %c0_i32_0 = arith.constant 0 : i32
    return %arg0, %arg1, %c0_i32 : i32, i32, i32
  }
}

</mosaic_0001>

<bundles_post_ra>
// kernel: tpu_custom_call.1
= control target key start
LH: loop header
LB: loop body
LE: loop exit
PB: predicated region body
PF: predicated region fallthrough
CT: control target
= control target key end

     0   :  { %14 = vsyncpa [#allocation3], 0  ;;  %s2209_s0 = inlined_call_operand.vmem [shape: bf16[2,128,3], index: 0, kind: input, shape index: {}]   ;;  %s2210_s1 = inlined_call_operand.vmem [shape: bf16[2,128,4], index: 1, kind: input, shape index: {}]   ;;  %s2211_s2 = inlined_call_operand.vmem [shape: bf16[2,16,4], index: 2, kind: input, shape index: {}]   ;;  %s2212_s3 = inlined_call_operand.vmem [shape: bf16[3,32], index: 3, kind: input, shape index: {}]   ;;  %s2213_s4 = inlined_call_operand.vmem [shape: bf16[4,32], index: 4, kind: input, shape index: {}]   ;;  %s2214_s5 = inlined_call_operand.vmem [shape: bf16[4,32], index: 5, kind: input, shape index: {}]   ;;  %s2215_s6 = inlined_call_operand.vmem [shape: f32[1,32], index: 6, kind: input, shape index: {}]   ;;  %s2216_s7 = inlined_call_operand.vmem [shape: bf16[32,128], index: 7, kind: input, shape index: {}]   ;;  %s2217_s8 = inlined_call_operand.vmem [shape: f32[1,128], index: 8, kind: input, shape index: {}]   ;;  %s2218_s9 = inlined_call_operand.hbm [shape: f32[2,16,128], index: 9, kind: output, shape index: {}]  }
   0x1   :  { %16 = vsyncpa [#allocation3 + $0x1], 0  ;;  %s1891_s30 = smov 0   ;;  %s1893_s10 = smov 0  }
   0x2   :  { %s1895_s11 = smov 0   ;;  %s1897_s12 = smov 0  }
   0x3   :  { %s1899_s13 = smov 0   ;;  %s1901_s14 = smov 0  }
   0x4 LB: > { %s1514_s15 = sadd.s32 4294967295, %s1832_s14   ;;  %s1515_s16 = sadd.s32 4294967294, %s1832_s14   ;;  %s1832_s14 = sphi %s1901_s14, %s22_s14   ;;  %s1828_s13 = sphi %s1899_s13, %s2225_s13   ;;  %s1824_s12 = sphi %s1897_s12, %s2224_s12   ;;  %s1820_s11 = sphi %s1895_s11, %s2223_s11   ;;  %s1816_s10 = sphi %s1893_s10, %s2222_s10   ;;  %s1812_s30 = sphi %s1891_s30, %s2221_s30  }
   0x5   : > { %s34_s17 = sadd.s32 1, %s1828_s13  ;;  %s253_s18 = sadd.s32 1, %s1820_s11 }
   0x6   : > { %p36_p0 = scmp.ge.s32.totalorder %s34_s17, 2  ;;  %p263_p1 = scmp.ne.s32.totalorder %s1820_s11, %s1816_s10 }
   0x7   : > { %p264_p2 = scmp.eq.s32.totalorder %s1514_s15, 1  ;;  %p269_p3 = scmp.ne.s32.totalorder %s1816_s10, %s1812_s30 }
   0x8   : > { %s2227_s17 = smov (%p36_p0, %s34_s17), 0  ;;  %p270_p5 = scmp.eq.s32.totalorder %s1515_s16, 1 }
   0x9   : > { %p1931_p4 = por %p264_p2, %p263_p1  ;;  %s248_s20 = ssub.s32 %s1828_s13, %s2227_s17 }
   0xa   : > { %p1518_p6 = scmp.ge.s32.totalorder %s1832_s14, 1  ;;  %p251_p7 = scmp.eq.s32.totalorder %s248_s20, 0 }
   0xb   : > { %p1938_p8 = por %p270_p5, %p269_p3  ;;  %p345_p9 = scmp.lt.s32.totalorder %s1832_s14, 3 }
   0xc   : > { %s1944_s22 = scalar_select %p251_p7, %s1820_s11, %s253_s18  }
   0xd   : > { %p346_p10 = pnand %p1518_p6, %p345_p9 }
   0xe   : > { %p404_p11 = scmp.lt.s32.totalorder (!%p346_p10), %s1824_s12, 1  ;;  %s1580_s15 = sshll.u32 (!%p346_p10), %s1824_s12, 8 }
   0xf   : > { %349 = sbr.rel (%p346_p10) target bundleno = 535 (0x217), region = 56  ;;  %s1838_s25 = smov (!%p346_p10), [#allocation2]  }
  0x10   : > { %s1760_s26 = sshll.u32 (!%p346_p10), %s1838_s25, 4  ;;  %s1761_s26 = int_to_ptr.vmem [resolvable:$false] %s1760_s26 }
  0x14   : > { %v470_v0 = vld [vmem:[%s2213_s4] sm:$0x3]  ;;  %vm536_vm0 = vcmask 1041408   ;;  %vm702_vm1 = vcmask 1040384   ;;  %v1834_v1 = vmov 65535   ;;  %s1957_s27 = scalar_select %p404_p11, %s1824_s12, 1  ;;  %v871_v50 = vlaneseq }
  0x15   : > { %1675 = vmatprep.subr.msk.bf16.mxu0 %vm536_vm0, %v470_v0  ;;  %v703_v2 = vsel %vm702_vm1, 4294967295, %v1834_v1  ;;  %v538_v3 = vsel %vm536_vm0, %v470_v0, 0  ;;  %v469_v4 = vld [vmem:[%s2212_s3] sm:$0x3]  ;;  %vm511_vm2 = vcmask 31744   ;;  %vm677_vm3 = vcmask 23552  }
  0x16   : > { %v704_v5 = vsel %vm536_vm0, %v703_v2, 0  ;;  %1612 = vmatpush3.bf16.msra.mxu0 %v538_v3  ;;  %s1577_s28 = sshll.u32 %s1957_s27, 6  ;;  %v1835_v12 = vmov 0.0   ;;  %s1579_s24 = sshll.u32 %s1957_s27, 3  ;;  %v805_v23 = vld [vmem:[%s2214_s5] sm:$0x3] }
  0x17   : > { %v706_v6 = vand.u32 %v704_v5, %v469_v4  ;;  %s1963_s16 = scalar_lea.vmem %s2210_s1, %s1577_s28  ;;  %s1969_s23 = scalar_lea.vmem %s2209_s0, %s1577_s28  ;;  %v822_v25 = vsel %vm536_vm0, %v805_v23, 0  ;;  %vm1836_vm4 = vmmov 0   ;;  %v1754_v27 = vld [vmem:[%s2216_s7 + $0x8] sm:$0xff]   ;;  %v1755_v28 = vld [vmem:[%s2216_s7] sm:$0xff]   ;;  %v1837_v48 = vmov 1966171168  }
  0x18   : > { %v1737_v7 = vld [vmem:[%s1963_s16] sm:$0xff]   ;;  %v1738_v8 = vld [vmem:[%s1963_s16 + $0x8] sm:$0xff]   ;;  %v1739_v9 = vld [vmem:[%s1963_s16 + $0x10] sm:$0xff]   ;;  %s431_s28 = scalar_lea.vmem %s2211_s2, %s1579_s24  ;;  %v869_v49 = vunpack.c.l.s4 %v1837_v48  ;;  %v872_v55 = vshrl.u32 %v871_v50, 7  ;;  %vm1108_vm5 = vcmask 261120   ;;  %vm1358_vm6 = vcmask 1041409  }
  0x19   : > { %1629 = vmatprep.subr.bf16.mxu0 %v706_v6  ;;  %1673 = vmatprep.subr.bf16.mxu1 %v706_v6  ;;  %v1740_v10 = vld [vmem:[%s1969_s23 + $0x10] sm:$0xff]   ;;  %v1742_v11 = vld [vmem:[%s1969_s23 + $0x18] sm:$0xff]   ;;  %v1744_v14 = vld [vmem:[%s1969_s23 + $0x20] sm:$0xff]   ;;  %vm1360_vm7 = vcmask 1042434   ;;  %vm1362_vm8 = vcmask 1043459   ;;  %vm1364_vm9 = vcmask 1044484  }
  0x1a   : > { %1674 = vmatpush3.bf16.msra.mxu1 %v706_v6  ;;  %1613 = vmatprep.mubr.msk.bf16.mxu0 %vm511_vm2, %v1737_v7  ;;  %v1741_v13 = vld [vmem:[%s1963_s16 + $0x18] sm:$0xff]   ;;  %v1743_v15 = vld [vmem:[%s1963_s16 + $0x20] sm:$0xff]   ;;  %v1746_v16 = vld [vmem:[%s1969_s23 + $0x28] sm:$0xff]   ;;  %v870_v54 = vunpack.c.0.s8 %v869_v49  ;;  %v2053_v3 = vsub.s32 0, %v872_v55  ;;  %vm1366_vm10 = vcmask 1045509   ;;  %vm1368_vm11 = vcmask 1046534  }
  0x1b   : > { %1614 = vmatmul.mubr.msk.bf16.vlgmr.msra.gmra.mxu0 %vm511_vm2, %v1738_v8  ;;  %1635 = vmatprep.mubr.msk.bf16.mxu1 %vm677_vm3, %v1740_v10  ;;  %v1748_v17 = vld [vmem:[%s1969_s23 + $0x30] sm:$0xff]   ;;  %v1745_v18 = vld [vmem:[%s1963_s16 + $0x28] sm:$0xff]   ;;  %v1750_v20 = vld [vmem:[%s1969_s23 + $0x38] sm:$0xff]   ;;  %vm1370_vm12 = vcmask 1047559  }
  0x1c   : > { %1630 = vmatpush3.bf16.msra.mxu0 %v706_v6  ;;  %1617 = vmatprep.mubr.msk.bf16.mxu0 %vm511_vm2, %v1739_v9  ;;  %v1747_v19 = vld [vmem:[%s1963_s16 + $0x30] sm:$0xff]   ;;  %v1749_v21 = vld [vmem:[%s1963_s16 + $0x38] sm:$0xff]   ;;  %v1751_v22 = vld [vmem:[%s1969_s23] sm:$0xff]   ;;  %v2048_v60 = vsub.s32 %v870_v54, %v872_v55 }
  0x1d   : > { %1647 = vmatprep.subr.bf16.mxu0 %v1835_v12  ;;  %1636 = vmatmul.mubr.msk.bf16.vlgmr.msra.gmra.mxu1 %vm677_vm3, %v1742_v11  ;;  %v1752_v24 = vld [vmem:[%s1969_s23 + $0x8] sm:$0xff]   ;;  %v1753_v26 = vld [vmem:[%s431_s28] sm:$0xff]   ;;  %s400_s28 = sand.u32 1, %s1816_s10   ;;  %s2155_s23 = scalar_lea.hbm %s2218_s9, %s1580_s15 }
  0x1e   : > { %1639 = vmatprep.mubr.msk.bf16.mxu1 %vm677_vm3, %v1744_v14  ;;  %1653 = vmatprep.subr.bf16.mxu1 %v1754_v27  ;;  %v1558_v59 = vld [vmem:[%s2215_s6] ss:$0 sm:$0xff]  ;;  %s1519_s27 = sshll.u32 %s400_s28, 4  ;;  %s2164_s12 = scalar_lea.sflag [#allocation3], %s400_s28 }
  0x1f   : > { %1654 = vmatpush3.bf16.msra.mxu1 %v1754_v27  ;;  %s2142_s29 = scalar_lea.vmem [#allocation2], %s1519_s27  ;;  %s1762_s27 = scalar_lea.vmem %s1761_s26, 512 }
  0x20   : > { %1655 = vmatprep.subr.bf16.mxu1 %v1755_v28  ;;  %s1399_s16 = sshll.u32 %s2142_s29, 4  ;;  %s2157_s16 = int_to_ptr.vmem [resolvable:$true] %s1399_s16 }
  0x21   : > { %s1756_s24 = scalar_lea.vmem %s2157_s16, 256  ;;  %p1763_p1 = scmp.lt.s32.totalorder %s2157_s16, %s1761_s26 }
  0x22   : > { %p1757_p12 = scmp.ne.s32.totalorder %s2157_s16, %s1756_s24  ;;  %p1764_p2 = scmp.lt.s32.totalorder %s1762_s27, %s1756_s24 }
  0x23   : > { %1618 = vmatmul.mubr.msk.bf16.gmra.mxu0 %vm511_vm2, %v1741_v13  ;;  %1656 = vmatpush3.bf16.msra.mxu1 %v1755_v28 }
  0x24   : > { %1621 = vmatprep.mubr.msk.bf16.mxu0 %vm511_vm2, %v1743_v15  ;;  %p1758_p13 = pnand %p1757_p12, %p1931_p4  ;;  %p1765_p3 = por %p1764_p2, %p1763_p1 }
  0x25   : > { %1640 = vmatmul.mubr.msk.bf16.gmra.mxu1 %vm677_vm3, %v1746_v16 }
  0x26   : > { %1643 = vmatprep.mubr.msk.bf16.mxu1 %vm677_vm3, %v1748_v17  ;;  %p1759_p0 = pneg %p1758_p13 }
  0x28   : > { %p1766_p5 = pnand %p1765_p3, %p1759_p0 }
  0x2b   : > { %1622 = vmatmul.mubr.msk.bf16.gmra.mxu0 %vm511_vm2, %v1745_v18 }
  0x2c   : > { %1625 = vmatprep.mubr.msk.bf16.mxu0 %vm511_vm2, %v1747_v19 }
  0x2d   : > { %1644 = vmatmul.mubr.msk.bf16.gmra.mxu1 %vm677_vm3, %v1750_v20 }
  0x33   : > { %1626 = vmatmul.mubr.msk.bf16.gmra.mxu0 %vm511_vm2, %v1749_v21 }
  0x34   : > { %1631 = vmatprep.mubr.msk.bf16.mxu0 %vm677_vm3, %v1751_v22 }
  0x3b   : > { %1632 = vmatmul.mubr.msk.bf16.vlgmr.msra.gmra.mxu0 %vm677_vm3, %v1752_v24 }
  0x3c   : > { %1648 = vmatpush3.bf16.msra.mxu0 %v822_v25  ;;  %1649 = vmatprep.mubr.msk.bf16.mxu0 %vm1836_vm4, %v1835_v12 }
  0x43   : > { %1650 = vmatmul.mubr.msk.bf16.vlgmr.msra.gmra.mxu0 %vm511_vm2, %v1753_v26 }
  0xdb   : > { %v1615_v29 = vpop.f32.mrf.mxu0 }
  0xdd   : > { %v574_v30 = vpop.f32.mrf.mxu0  ;;  %v2029_v40 = vpop.f32.mrf.mxu1 }
  0xdf   : > { %v1616_v31 = vpop.f32.mrf.mxu0  ;;  %v758_v43 = vpop.f32.mrf.mxu1 }
  0xe1   : > { %v577_v32 = vpop.f32.mrf.mxu0  ;;  %v2039_v46 = vpop.f32.mrf.mxu1 }
  0xe3   : > { %v2017_v33 = vpop.f32.mrf.mxu0  ;;  %v761_v52 = vpop.f32.mrf.mxu1 }
  0xe5   : > { %v590_v34 = vpop.f32.mrf.mxu0  ;;  %v2043_v57 = vpop.f32.mrf.mxu1 }
  0xe6   : > { %v759_v49 = vadd.f32 %v758_v43, %v590_v34 }
  0xe7   : > { %v2019_v35 = vpop.f32.mrf.mxu0  ;;  %v2050_v62 = vpop.f32.mrf.mxu1 }
  0xe8   : > { %v770_v43 = vadd.f32 %v2039_v46, %v2019_v35 }
  0xe9   : > { %v2021_v36 = vpop.f32.mrf.mxu0  ;;  %v2055_v5 = vpop.f32.mrf.mxu1 }
  0xeb   : > { %v2023_v37 = vpop.f32.mrf.mxu0  ;;  %v777_v16 = vpop.f32.mrf.mxu1 }
  0xed   : > { %v2025_v38 = vpop.f32.mrf.mxu0  ;;  %v2068_v50 = vpop.f32.mrf.mxu1 }
  0xef   : > { %v2027_v39 = vpop.f32.mrf.mxu0 }
  0xf1   : > { %v2031_v41 = vpop.f32.mrf.mxu0 }
  0xf3   : > { %v2033_v42 = vpop.f32.mrf.mxu0 }
  0xf5   : > { %v2035_v44 = vpop.f32.mrf.mxu0 }
  0xf7   : > { %v2037_v45 = vpop.f32.mrf.mxu0 }
  0xf9   : > { %v2041_v47 = vpop.f32.mrf.mxu0 }
  0xfb   : > { %v1633_v51 = vpop.f32.mrf.mxu0 }
  0xfc   : > { %v751_v23 = vadd.f32 %v1633_v51, %v1615_v29 }
  0xfd   : > { %v742_v53 = vpop.f32.mrf.mxu0 }
  0xfe   : > { %v743_v24 = vadd.f32 %v742_v53, %v574_v30 }
  0xff   : > { %v1634_v56 = vpop.f32.mrf.mxu0 }
 0x100   : > { %v754_v25 = vadd.f32 %v1634_v56, %v1616_v31 }
 0x101   : > { %v745_v58 = vpop.f32.mrf.mxu0 }
 0x102   : > { %v746_v27 = vadd.f32 %v745_v58, %v577_v32  ;;  %v762_v32 = vadd.f32 %v761_v52, %v2021_v36  ;;  %v790_v58 = vpop.f32.mrf.mxu1 }
 0x103   : > { %v858_v61 = vpop.f32.mrf.mxu0 }
 0x104   : > { %v859_v63 = vadd.f32 %v1558_v59, %v858_v61 }
 0x105   : > { %v1651_v0 = vpop.f32.mrf.mxu0 }
 0x106   : > { %v867_v1 = vcombine.high %v859_v63, %v859_v63  ;;  %v874_v2 = vrot.slane %v859_v63, %v2048_v60 }
 0x107   : > { %v861_v4 = vpop.f32.mrf.mxu0 }
 0x108   : > { %v881_v6 = vrot.slane %v867_v1, %v2048_v60  ;;  %v882_v7 = vcombine.high %v874_v2, %v874_v2  ;;  %v890_v8 = vrot.slane %v874_v2, %v2048_v60  ;;  %v862_v9 = vadd.f32 %v1558_v59, %v861_v4 }
 0x109   : > { %v1652_v10 = vpop.f32.mrf.mxu0 }
 0x10a   : > { %v883_v11 = vcombine.high %v881_v6, %v881_v6  ;;  %v904_v12 = vrot.slane %v882_v7, %v2048_v60  ;;  %v912_v13 = vcombine.high %v890_v8, %v890_v8  ;;  %v897_v14 = vrot.slane %v881_v6, %v2048_v60 }
 0x10b   : > { %v923_v15 = vrot.slane %v862_v9, %v2048_v60  ;;  %v968_v18 = vrot.slane %v890_v8, %v2053_v3  ;;  %v916_v22 = vcombine.high %v862_v9, %v862_v9  ;;  %v778_v8 = vadd.f32 %v777_v16, %v2031_v41 }
 0x10c   : > { %v914_v17 = vcombine.high %v904_v12, %v904_v12  ;;  %v911_v19 = vrot.slane %v883_v11, %v2048_v60  ;;  %v972_v20 = vrot.slane %v904_v12, %v2053_v3  ;;  %v976_v21 = vrot.slane %v912_v13, %v2053_v3  ;;  %v1646_v13 = vpop.f32.mrf.mxu1 }
 0x10d   : > { %v984_v28 = vrot.slane %v897_v14, %v2053_v3  ;;  %v931_v48 = vcombine.high %v923_v15, %v923_v15  ;;  %v1045_v54 = vadd.f32 %v968_v18, %v743_v24  ;;  %v930_v63 = vrot.slane %v916_v22, %v2048_v60 }
 0x10e   : > { %v980_v26 = vrot.slane %v914_v17, %v2053_v3  ;;  %v1047_v55 = vadd.f32 %v976_v21, %v751_v23  ;;  %v988_v61 = vrot.slane %v911_v19, %v2053_v3  ;;  %v1046_v30 = vadd.f32 %v972_v20, %v746_v27 }
 0x10f   : > { %v953_v29 = vrot.slane %v931_v48, %v2048_v60  ;;  %v913_v31 = vcombine.high %v897_v14, %v897_v14  ;;  %v915_v51 = vcombine.high %v911_v19, %v911_v19  ;;  %v939_v56 = vrot.slane %v923_v15, %v2048_v60 }
 0x110   : > { %v1048_v59 = vadd.f32 %v980_v26, %v754_v25  ;;  %v1049_v34 = vadd.f32 %v984_v28, %v759_v49  ;;  %v1061_v0 = vmax.f32 %v1045_v54, 0.0  ;;  %v1063_v1 = vmax.f32 %v1047_v55, 0.0 }
 0x111   : > { %v932_v2 = vcombine.high %v930_v63, %v930_v63  ;;  %v1004_v4 = vrot.slane %v953_v29, %v2053_v3  ;;  %v1062_v6 = vmax.f32 %v1046_v30, 0.0  ;;  %v1050_v7 = vadd.f32 %v988_v61, %v762_v32 }
 0x112   : > { %v1064_v53 = vmax.f32 %v1048_v59, 0.0  ;;  %v992_v9 = vrot.slane %v913_v31, %v2053_v3  ;;  %v996_v52 = vrot.slane %v915_v51, %v2053_v3  ;;  %v1000_v10 = vrot.slane %v939_v56, %v2053_v3 }
 0x113   : > { %v1077_v11 = vpack.c.bf16 %v1062_v6, %v1061_v0  ;;  %v1065_v35 = vmax.f32 %v1049_v34, 0.0  ;;  %v1066_v46 = vmax.f32 %v1050_v7, 0.0  ;;  %v767_v12 = vadd.f32 %v2029_v40, %v2017_v33  ;;  %v793_v33 = vpop.f32.mrf.mxu1 }
 0x114   : > { %v1078_v36 = vpack.c.bf16 %v1064_v53, %v1063_v1  ;;  %v963_v14 = vcombine.high %v953_v29, %v953_v29  ;;  %v1052_v15 = vadd.f32 %v996_v52, %v770_v43  ;;  %v775_v17 = vadd.f32 %v2050_v62, %v2025_v38 }
 0x115   : > { %v960_v41 = vrot.slane %v932_v2, %v2048_v60  ;;  %1657 = vmatprep.mubr.msk.bf16.mxu1 %vm1108_vm5, %v1077_v11  ;;  %v1079_v16 = vpack.c.bf16 %v1066_v46, %v1065_v35  ;;  %v1054_v18 = vadd.f32 %v1004_v4, %v778_v8  ;;  %v961_v19 = vcombine.high %v939_v56, %v939_v56 }
 0x116   : > { %1658 = vmatmul.mubr.msk.bf16.vlgmr.msra.gmra.mxu1 %vm1108_vm5, %v1078_v36  ;;  %v1051_v20 = vadd.f32 %v992_v9, %v767_v12  ;;  %v946_v21 = vrot.slane %v930_v63, %v2048_v60  ;;  %v1053_v22 = vadd.f32 %v1000_v10, %v775_v17  ;;  %v1012_v40 = vrot.slane %v963_v14, %v2053_v3 }
 0x117   : > { %1661 = vmatprep.mubr.msk.bf16.mxu1 %vm1108_vm5, %v1079_v16  ;;  %v1068_v23 = vmax.f32 %v1052_v15, 0.0  ;;  %v1020_v38 = vrot.slane %v960_v41, %v2053_v3  ;;  %v1070_v62 = vmax.f32 %v1054_v18, 0.0  ;;  %v786_v24 = vadd.f32 %v2055_v5, %v2027_v39 }
 0x118   : > { %v1008_v25 = vrot.slane %v961_v19, %v2053_v3  ;;  %v1067_v26 = vmax.f32 %v1051_v20, 0.0  ;;  %v794_v27 = vadd.f32 %v793_v33, %v2041_v47  ;;  %v1016_v60 = vrot.slane %v946_v21, %v2053_v3 }
 0x119   : > { %v1069_v28 = vmax.f32 %v1053_v22, 0.0  ;;  %v783_v48 = vadd.f32 %v2043_v57, %v2023_v37  ;;  %v964_v49 = vcombine.high %v960_v41, %v960_v41  ;;  %v1056_v55 = vadd.f32 %v1012_v40, %v786_v24 }
 0x11a   : > { %v1080_v54 = vpack.c.bf16 %v1068_v23, %v1067_v26  ;;  %v791_v59 = vadd.f32 %v790_v58, %v2035_v44  ;;  %v1058_v63 = vadd.f32 %v1020_v38, %v794_v27  ;;  %v962_v29 = vcombine.high %v946_v21, %v946_v21 }
 0x11b   : > { %v1081_v61 = vpack.c.bf16 %v1070_v62, %v1069_v28  ;;  %v1055_v39 = vadd.f32 %v1008_v25, %v783_v48  ;;  %v1072_v5 = vmax.f32 %v1056_v55, 0.0  ;;  %v1028_v30 = vrot.slane %v964_v49, %v2053_v3 }
 0x11c   : > { %v1057_v47 = vadd.f32 %v1016_v60, %v791_v59  ;;  %v1074_v31 = vmax.f32 %v1058_v63, 0.0  ;;  %v802_v37 = vadd.f32 %v1646_v13, %v2037_v45  ;;  %v1024_v57 = vrot.slane %v962_v29, %v2053_v3  ;;  %v2114_v45 = vld [vmem:[%s2217_s8] ss:$0 sm:$0xff] }
 0x11d   : > { %v1071_v51 = vmax.f32 %v1055_v39, 0.0  ;;  %v799_v44 = vadd.f32 %v2068_v50, %v2033_v42 }
 0x11e   : > { %1662 = vmatmul.mubr.msk.bf16.gmra.mxu1 %vm1108_vm5, %v1080_v54  ;;  %v1073_v53 = vmax.f32 %v1057_v47, 0.0  ;;  %v1060_v56 = vadd.f32 %v1028_v30, %v802_v37 }
 0x11f   : > { %1665 = vmatprep.mubr.msk.bf16.mxu1 %vm1108_vm5, %v1081_v61  ;;  %v1082_v32 = vpack.c.bf16 %v1072_v5, %v1071_v51  ;;  %v1059_v43 = vadd.f32 %v1024_v57, %v799_v44 }
 0x120   : > { %v1083_v34 = vpack.c.bf16 %v1074_v31, %v1073_v53  ;;  %v1076_v58 = vmax.f32 %v1060_v56, 0.0 }
 0x121   : > { %v1075_v0 = vmax.f32 %v1059_v43, 0.0 }
 0x123   : > { %v1084_v1 = vpack.c.bf16 %v1076_v58, %v1075_v0 }
 0x126   : > { %1666 = vmatmul.mubr.msk.bf16.gmra.mxu1 %vm1108_vm5, %v1082_v32 }
 0x127   : > { %1669 = vmatprep.mubr.msk.bf16.mxu1 %vm1108_vm5, %v1083_v34 }
 0x12e   : > { %1670 = vmatmul.mubr.msk.bf16.gmra.mxu1 %vm1108_vm5, %v1084_v1 }
 0x1d6   : > { %v1659_v3 = vpop.f32.mrf.mxu1 }
 0x1d7   : > { %v1176_v42 = vadd.f32 %v1659_v3, %v2114_v45 }
 0x1d8   : > { %v1167_v50 = vpop.f32.mrf.mxu1 }
 0x1d9   : > { %v1232_v2 = vmax.f32 %v1176_v42, 0.0  ;;  %v1168_v4 = vadd.f32 %v2114_v45, %v1167_v50 }
 0x1da   : > { %v1660_v6 = vpop.f32.mrf.mxu1 }
 0x1db   : > { %v1258_v7 = vrot.slane %v1232_v2, 4  ;;  %v1230_v8 = vmax.f32 %v1168_v4, 0.0  ;;  %v1179_v9 = vadd.f32 %v1660_v6, %v2114_v45 }
 0x1dc   : > { %v1170_v36 = vpop.f32.mrf.mxu1 }
 0x1dd   : > { %v1259_v52 = vmax.f32 %v1232_v2, %v1258_v7  ;;  %v1246_v10 = vrot.slane %v1230_v8, 4  ;;  %v1233_v11 = vmax.f32 %v1179_v9, 0.0  ;;  %v1171_v35 = vadd.f32 %v2114_v45, %v1170_v36 }
 0x1de   : > { %v1663_v46 = vpop.f32.mrf.mxu1 }
 0x1df   : > { %v1260_v12 = vrot.slane %v1259_v52, 2  ;;  %v1247_v13 = vmax.f32 %v1230_v8, %v1246_v10  ;;  %v1264_v14 = vrot.slane %v1233_v11, 4  ;;  %v1231_v15 = vmax.f32 %v1171_v35, 0.0 }
 0x1e0   : > { %v1192_v17 = vadd.f32 %v1663_v46, %v2114_v45  ;;  %v1183_v41 = vpop.f32.mrf.mxu1 }
 0x1e1   : > { %v1261_v16 = vmax.f32 %v1259_v52, %v1260_v12  ;;  %v1248_v18 = vrot.slane %v1247_v13, 2  ;;  %v1265_v19 = vmax.f32 %v1233_v11, %v1264_v14  ;;  %v1252_v20 = vrot.slane %v1231_v15, 4 }
 0x1e2   : > { %v1236_v21 = vmax.f32 %v1192_v17, 0.0  ;;  %v1184_v22 = vadd.f32 %v2114_v45, %v1183_v41  ;;  %v1664_v33 = vpop.f32.mrf.mxu1 }
 0x1e3   : > { %v1262_v40 = vrot.slane %v1261_v16, 1  ;;  %v1249_v23 = vmax.f32 %v1247_v13, %v1248_v18  ;;  %v1266_v38 = vrot.slane %v1265_v19, 2  ;;  %v1253_v62 = vmax.f32 %v1231_v15, %v1252_v20 }
 0x1e4   : > { %v1282_v24 = vrot.slane %v1236_v21, 4  ;;  %v1234_v25 = vmax.f32 %v1184_v22, 0.0  ;;  %v1195_v26 = vadd.f32 %v1664_v33, %v2114_v45  ;;  %v1186_v27 = vpop.f32.mrf.mxu1 }
 0x1e5   : > { %v1250_v60 = vrot.slane %v1249_v23, 1  ;;  %v1254_v28 = vrot.slane %v1253_v62, 2  ;;  %v1187_v55 = vadd.f32 %v2114_v45, %v1186_v27  ;;  %v1263_v61 = vmax.f32 %v1261_v16, %v1262_v40 }
 0x1e6   : > { %v1283_v48 = vmax.f32 %v1236_v21, %v1282_v24  ;;  %v1270_v49 = vrot.slane %v1234_v25, 4  ;;  %v1237_v54 = vmax.f32 %v1195_v26, 0.0  ;;  %v1667_v59 = vpop.f32.mrf.mxu1  ;;  %v1267_v63 = vmax.f32 %v1265_v19, %v1266_v38 }
 0x1e7   : > { %v1255_v29 = vmax.f32 %v1253_v62, %v1254_v28  ;;  %v1208_v39 = vadd.f32 %v1667_v59, %v2114_v45  ;;  %v1235_v31 = vmax.f32 %v1187_v55, 0.0  ;;  %v1251_v57 = vmax.f32 %v1249_v23, %v1250_v60 }
 0x1e8   : > { %v1284_v47 = vrot.slane %v1283_v48, 2  ;;  %v1271_v5 = vmax.f32 %v1234_v25, %v1270_v49  ;;  %v1288_v30 = vrot.slane %v1237_v54, 4  ;;  %v1199_v37 = vpop.f32.mrf.mxu1  ;;  %v1268_v50 = vrot.slane %v1267_v63, 1 }
 0x1e9   : > { %v1256_v51 = vrot.slane %v1255_v29, 1  ;;  %v1240_v53 = vmax.f32 %v1208_v39, 0.0  ;;  %v1200_v44 = vadd.f32 %v2114_v45, %v1199_v37  ;;  %v1276_v43 = vrot.slane %v1235_v31, 4 }
 0x1ea   : > { %v1285_v32 = vmax.f32 %v1283_v48, %v1284_v47  ;;  %v1272_v56 = vrot.slane %v1271_v5, 2  ;;  %v1289_v34 = vmax.f32 %v1237_v54, %v1288_v30  ;;  %v1668_v58 = vpop.f32.mrf.mxu1  ;;  %v1269_v15 = vmax.f32 %v1267_v63, %v1268_v50 }
 0x1eb   : > { %v1257_v0 = vmax.f32 %v1255_v29, %v1256_v51  ;;  %v1306_v1 = vrot.slane %v1240_v53, 4  ;;  %v1238_v3 = vmax.f32 %v1200_v44, 0.0  ;;  %v1211_v42 = vadd.f32 %v1668_v58, %v2114_v45 }
 0x1ec   : > { %v1273_v2 = vmax.f32 %v1271_v5, %v1272_v56  ;;  %v1290_v4 = vrot.slane %v1289_v34, 2  ;;  %v1277_v6 = vmax.f32 %v1235_v31, %v1276_v43  ;;  %v1202_v7 = vpop.f32.mrf.mxu1  ;;  %v1286_v10 = vrot.slane %v1285_v32, 1 }
 0x1ed   : > { %v1359_v8 = vsel %vm1358_vm6, %v1257_v0, %v1251_v57  ;;  %v1307_v9 = vmax.f32 %v1240_v53, %v1306_v1  ;;  %v1294_v36 = vrot.slane %v1238_v3, 4  ;;  %v1241_v52 = vmax.f32 %v1211_v42, 0.0 }
 0x1ee   : > { %v1274_v11 = vrot.slane %v1273_v2, 1  ;;  %v1671_v35 = vpop.f32.mrf.mxu1  ;;  %v1361_v46 = vsel %vm1360_vm7, %v1263_v61, %v1359_v8  ;;  %v1291_v12 = vmax.f32 %v1289_v34, %v1290_v4  ;;  %v1278_v13 = vrot.slane %v1277_v6, 2 }
 0x1ef   : > { %v1295_v14 = vmax.f32 %v1238_v3, %v1294_v36  ;;  %v1308_v17 = vrot.slane %v1307_v9, 2  ;;  %v1312_v41 = vrot.slane %v1241_v52, 4  ;;  %v1203_v16 = vadd.f32 %v2114_v45, %v1202_v7 }
 0x1f0   : > { %v1215_v18 = vpop.f32.mrf.mxu1  ;;  %v1275_v19 = vmax.f32 %v1273_v2, %v1274_v11  ;;  %v1279_v20 = vmax.f32 %v1277_v6, %v1278_v13  ;;  %v1224_v21 = vadd.f32 %v1671_v35, %v2114_v45  ;;  %v1363_v22 = vsel %vm1362_vm8, %v1269_v15, %v1361_v46 }
 0x1f1   : > { %v1296_v33 = vrot.slane %v1295_v14, 2  ;;  %v1313_v40 = vmax.f32 %v1241_v52, %v1312_v41  ;;  %v1239_v23 = vmax.f32 %v1203_v16, 0.0  ;;  %v1287_v62 = vmax.f32 %v1285_v32, %v1286_v10 }
 0x1f2   : > { %v1672_v38 = vpop.f32.mrf.mxu1  ;;  %v1292_v24 = vrot.slane %v1291_v12, 1  ;;  %v1280_v25 = vrot.slane %v1279_v20, 1  ;;  %v1244_v26 = vmax.f32 %v1224_v21, 0.0  ;;  %v1309_v27 = vmax.f32 %v1307_v9, %v1308_v17 }
 0x1f3   : > { %v1300_v60 = vrot.slane %v1239_v23, 4  ;;  %v1216_v28 = vadd.f32 %v2114_v45, %v1215_v18  ;;  %v1227_v48 = vadd.f32 %v1672_v38, %v2114_v45  ;;  %v1365_v54 = vsel %vm1364_vm9, %v1275_v19, %v1363_v22 }
 0x1f4   : > { %v1218_v49 = vpop.f32.mrf.mxu1  ;;  %v1281_v55 = vmax.f32 %v1279_v20, %v1280_v25  ;;  %v1314_v59 = vrot.slane %v1313_v40, 2  ;;  %v1330_v61 = vrot.slane %v1244_v26, 4  ;;  %v1297_v63 = vmax.f32 %v1295_v14, %v1296_v33 }
 0x1f5   : > { %v1301_v29 = vmax.f32 %v1239_v23, %v1300_v60  ;;  %v1242_v39 = vmax.f32 %v1216_v28, 0.0  ;;  %v1245_v47 = vmax.f32 %v1227_v48, 0.0  ;;  %v1293_v5 = vmax.f32 %v1291_v12, %v1292_v24 }
 0x1f6   : > { %v1367_v30 = vsel %vm1366_vm10, %v1281_v55, %v1365_v54  ;;  %v1331_v31 = vmax.f32 %v1244_v26, %v1330_v61  ;;  %v1219_v37 = vadd.f32 %v2114_v45, %v1218_v49  ;;  %v1315_v44 = vmax.f32 %v1313_v40, %v1314_v59 }
 0x1f7   : > { %v1369_v57 = vsel %vm1368_vm11, %v1287_v62, %v1367_v30  ;;  %v1302_v51 = vrot.slane %v1301_v29, 2  ;;  %v1318_v53 = vrot.slane %v1242_v39, 4  ;;  %v1336_v32 = vrot.slane %v1245_v47, 4 }
 0x1f8   : > { %v1243_v56 = vmax.f32 %v1219_v37, 0.0  ;;  %v1371_v34 = vsel %vm1370_vm12, %v1293_v5, %v1369_v57  ;;  %v1298_v43 = vrot.slane %v1297_v63, 1  ;;  %v1332_v0 = vrot.slane %v1331_v31, 2 }
 0x1f9   : > { %v1303_v58 = vmax.f32 %v1301_v29, %v1302_v51  ;;  %v1319_v1 = vmax.f32 %v1242_v39, %v1318_v53  ;;  %1381 = vst [vmem:[%s2142_s29] sm:$0xff] %v1371_v34  ;;  %v1310_v3 = vrot.slane %v1309_v27, 1  ;;  %v1337_v42 = vmax.f32 %v1245_v47, %v1336_v32 }
 0x1fa   : > { %v1324_v45 = vrot.slane %v1243_v56, 4  ;;  %v1316_v4 = vrot.slane %v1315_v44, 1  ;;  %v1299_v8 = vmax.f32 %v1297_v63, %v1298_v43  ;;  %v1333_v36 = vmax.f32 %v1331_v31, %v1332_v0 }
 0x1fb   : > { %v1304_v50 = vrot.slane %v1303_v58, 1  ;;  %v1320_v2 = vrot.slane %v1319_v1, 2  ;;  %v1338_v6 = vrot.slane %v1337_v42, 2  ;;  %v1311_v10 = vmax.f32 %v1309_v27, %v1310_v3 }
 0x1fc   : > { %v1325_v7 = vmax.f32 %v1243_v56, %v1324_v45  ;;  %v1317_v13 = vmax.f32 %v1315_v44, %v1316_v4  ;;  %v1334_v17 = vrot.slane %v1333_v36, 1 }
 0x1fd   : > { %v1305_v9 = vmax.f32 %v1303_v58, %v1304_v50  ;;  %v1321_v52 = vmax.f32 %v1319_v1, %v1320_v2  ;;  %v1339_v11 = vmax.f32 %v1337_v42, %v1338_v6 }
 0x1fe   : > { %v1326_v35 = vrot.slane %v1325_v7, 2  ;;  %v1335_v21 = vmax.f32 %v1333_v36, %v1334_v17 }
 0x1ff   : > { %v1372_v46 = vsel %vm1358_vm6, %v1305_v9, %v1299_v8  ;;  %v1322_v12 = vrot.slane %v1321_v52, 1  ;;  %v1340_v18 = vrot.slane %v1339_v11, 1 }
 0x200   : > { %v1373_v14 = vsel %vm1360_vm7, %v1311_v10, %v1372_v46  ;;  %v1327_v15 = vmax.f32 %v1325_v7, %v1326_v35 }
 0x201   : > { %v1323_v41 = vmax.f32 %v1321_v52, %v1322_v12  ;;  %v1374_v16 = vsel %vm1362_vm8, %v1317_v13, %v1373_v14  ;;  %v1341_v33 = vmax.f32 %v1339_v11, %v1340_v18 }
 0x202   : > { %v1328_v19 = vrot.slane %v1327_v15, 1 }
 0x203   : > { %v1375_v22 = vsel %vm1364_vm9, %v1323_v41, %v1374_v16 }
 0x204   : > { %v1329_v20 = vmax.f32 %v1327_v15, %v1328_v19 }
 0x206   : > { %v1376_v40 = vsel %vm1366_vm10, %v1329_v20, %v1375_v22 }
 0x207   : > { %v1377_v23 = vsel %vm1368_vm11, %v1335_v21, %v1376_v40 }
 0x208   : > { %v1378_v38 = vsel %vm1370_vm12, %v1341_v33, %v1377_v23 }
 0x209   : > { %1382 = vst [vmem:[%s2142_s29 + $0x8] sm:$0xff] %v1378_v38 }
 0x20a   : > { %1769 = shalt.err (!%p1766_p5)
}
 0x20b   : > { %s1770_s28 = scalar_lea.hbm %s2155_s23, 256  ;;  %s1774_s18 = scalar_lea.hbm %s2218_s9, 512 }
 0x20c   : > { %p1771_p6 = scmp.ne.s32.totalorder %s2155_s23, %s1770_s28  ;;  %p1775_p10 = scmp.lt.s32.totalorder %s2155_s23, %s2218_s9 }
 0x20d   : > { %p1776_p11 = scmp.lt.s32.totalorder %s1774_s18, %s1770_s28 }
 0x20e   : > { %p1772_p7 = pnand %p1771_p6, %p1931_p4 }
 0x20f   : > { %p1777_p12 = por %p1776_p11, %p1775_p10 }
 0x210   : > { %p1773_p9 = pneg %p1772_p7 }
 0x212   : > { %p1778_p13 = pnand %p1777_p12, %p1773_p9 }
 0x214   : > { %1781 = shalt.err (!%p1778_p13)
}
 0x215   : > { %s1839_s24 = smov 128   ;;  %s1840_s26 = smov 8  }
 0x216   : > { %1676 = dma.vmem_to_hbm [thread:$0]  (%p1931_p4), %s2157_s16, 256, %s2155_s23, %s2164_s12, %s1839_s24, %s1839_s24, %s1840_s26  }
 0x217 PF: > { %p1682_p0 = scmp.ge.s32.totalorder %s1832_s14, 2  ;;  %s1414_s27 = sand.u32 1, %s1812_s30  }
 0x218   : > { %s1415_s28 = scalar_lea.sflag [#allocation3], %s1414_s27 }
 0x219   : > { %p1679_p1 = pnand %p1682_p0, %p1938_p8 }
 0x21b   : > { %p1680_p2 = pneg %p1679_p1 }
 0x21d   : > { %1807 = dma.done.wait (%p1680_p2), %s1415_s28, 256  }
 0x21e   : > { %1809 = vsyncadd (%p1680_p2), %s1415_s28, 4294967040  ;;  %s22_s14 = sadd.s32 1, %s1832_s14   ;;  %s2221_s30 = smov %s1816_s10 }
 0x21f   : > { %p19_p3 = scmp.ge.s32.totalorder %s22_s14, 4   ;;  %s2222_s10 = smov %s1820_s11 }
 0x220   : > { %s2223_s11 = smov %s1944_s22  ;;  %s2224_s12 = smov %s1828_s13 }
 0x221   : > { %s2225_s13 = smov %s2227_s17  ;;  %21 = sbr.rel (!%p19_p3) target bundleno = 4 (0x4), region = 97 }
 0x226   :  { %1420 = vsyncpa [#allocation3], 1 }
 0x227   :  { %1422 = vsyncpa [#allocation3 + $0x1], 1 }

</bundles_post_ra>
